<compile_context>
chip_gen: v6e
topology: v6e:2x2x1
jax: 0.10.0
libtpu: 0.0.40
codegen_flags: <defaults>
</compile_context>

<pallas_src>
import functools
import math

import jax
import jax.numpy as jnp
from jax.experimental import pallas as pl
from jax.experimental.pallas import tpu as pltpu


def _focal_kernel(x_ref, t_ref, out_ref, *, alpha, gamma, eps, onehot_eps,
                  chunk_n, chunks_per_block, block_n, valid_hw, has_tail):
    """One grid step: (C, block_n) logits block -> (C, 128) partial sums."""
    C = x_ref.shape[0]
    block_start = pl.program_id(1) * block_n

    # Loop-invariant constants (hoisted: JAX does not CSE broadcast_in_dim).
    cls_iota = jax.lax.broadcasted_iota(jnp.int32, (C, chunk_n), 0)
    # -alpha folded into the one-hot constants (scatter + 1e-6 then split ->
    # true class gets 1+1e-6, every other class, incl. ignore labels which
    # match no class, gets the 1e-6 floor).
    coeff_hit = jnp.float32(-alpha * (1.0 + onehot_eps))
    coeff_miss = jnp.float32(-alpha * onehot_eps)
    log_eps = jnp.float32(math.log(eps))

    g = float(gamma)
    int_gamma = (g == int(g)) and (0 <= int(g) <= 8)

    def contrib_of(off):
        xs = x_ref[:, pl.ds(off, chunk_n)].astype(jnp.float32)   # (C, TN)
        ts = t_ref[:, pl.ds(off, chunk_n)].astype(jnp.int32)     # (1, TN)
        # Softmax over the class (sublane) axis.  Only exp is per-element EUP;
        # the log / reciprocal act on (1, TN) -> 1/C of the elements.
        m = jnp.max(xs, axis=0, keepdims=True)                   # (1, TN)
        xm = xs - m
        e = jnp.exp(xm)                                          # (C, TN) EUP
        s = jnp.sum(e, axis=0, keepdims=True)                    # (1, TN)
        p = e * (1.0 / s)            # softmax; module's "+1e-8" dropped
                                     # (<=1e-8 perturbation of the weight term)
        # log(softmax + eps) ~= max(log softmax, log eps): reproduces the eps
        # clamp of torch.log(input_soft) for confidently-wrong pixels.
        lp = jnp.maximum(xm - jnp.log(s), log_eps)
        omp = 1.0 - p
        if int_gamma:
            gi = int(g)
            if gi == 0:
                w = jnp.ones_like(omp)
            else:                    # integer gamma -> VPU multiply chain
                w = omp
                for _ in range(gi - 1):
                    w = w * omp
        else:
            w = jnp.power(jnp.maximum(omp, 0.0), jnp.float32(g))
        coeff = jnp.where(cls_iota == ts, coeff_hit, coeff_miss)
        return coeff * (w * lp)                                  # (C, TN)

    def fold(c):
        # (C, chunk_n) -> (C, 128): 128-aligned static slices, pure VPU adds.
        f = c[:, 0:128]
        for k in range(1, chunk_n // 128):
            f = f + c[:, k * 128:(k + 1) * 128]
        return f

    def body_full(ci, acc):
        off = pl.multiple_of(ci * chunk_n, 128)
        return acc + fold(contrib_of(off))

    acc0 = jnp.zeros((C, 128), jnp.float32)

    if not has_tail:
        # Every lane of every block is valid -> no mask anywhere.
        if chunks_per_block <= 4:
            acc = jax.lax.fori_loop(0, chunks_per_block, body_full, acc0,
                                    unroll=True)
        else:
            acc = jax.lax.fori_loop(0, chunks_per_block, body_full, acc0)
    else:
        # Mask is paid only on the (at most one) ragged tail chunk of the last
        # block; for every other block n_full == n_any == chunks_per_block and
        # the masked loop is empty.  Chunks past n_any (fully invalid) skipped.
        lane_iota = jax.lax.broadcasted_iota(jnp.int32, (1, chunk_n), 1)
        valid_in_block = valid_hw - block_start          # >= 1 by construction
        n_full = jnp.minimum(valid_in_block // chunk_n, chunks_per_block)
        n_any = jnp.minimum((valid_in_block + chunk_n - 1) // chunk_n,
                            chunks_per_block)

        def body_masked(ci, acc):
            off = pl.multiple_of(ci * chunk_n, 128)
            c = contrib_of(off)
            ok = (block_start + off + lane_iota) < valid_hw
            return acc + fold(jnp.where(ok, c, 0.0))

        acc = jax.lax.fori_loop(0, n_full, body_full, acc0)
        acc = jax.lax.fori_loop(n_full, n_any, body_masked, acc)

    out_ref[...] = acc


def _choose_tiles(C, HW_p, target_block_bytes):
    """(chunk_n, chunks_per_block): vreg-capped inner chunk, ~2 MiB DMA block."""
    c_rows = -(-C // 8)                         # sublane vreg-tiles per 128 lanes
    # keep ~6-8 live (C, chunk_n) f32 temps inside 64 vregs
    chunk_n = min(max(128, (6 // c_rows) * 128), HW_p)
    cpb = max(1, int(target_block_bytes) // (4 * C * chunk_n))
    cpb = min(cpb, HW_p // chunk_n)
    return chunk_n, cpb


def focal_loss_pallas(x_nchw, target_bhw, *, alpha, gamma=2.0, eps=1e-8,
                      ignore_index=30, onehot_eps=1e-6,
                      target_block_bytes=2 << 20):
    """x_nchw: (B, C, H, W) float logits; target_bhw: (B, H, W) int labels.

    ignore_index is handled implicitly: any label >= C only receives the
    1e-6 one-hot floor, exactly like the PyTorch scatter+split.
    """
    del ignore_index  # implicit (labels >= C match no class)
    B, C, H, W = x_nchw.shape
    HW = H * W

    # Free views (no transpose, no extra HBM pass): NCHW -> (B, C, HW).
    x = x_nchw.reshape(B, C, HW)
    t = target_bhw.reshape(B, 1, HW)

    HW_p = -(-HW // 128) * 128
    if HW_p != HW:
        # Rare ragged case (HW not a multiple of 128): small host-side pad so
        # every in-kernel slice stays 128-aligned; pad lanes are masked out.
        # TODO(synk): could be removed with an in-kernel ragged final chunk.
        x = jnp.pad(x, ((0, 0), (0, 0), (0, HW_p - HW)))
        t = jnp.pad(t, ((0, 0), (0, 0), (0, HW_p - HW)))

    chunk_n, cpb = _choose_tiles(C, HW_p, target_block_bytes)
    block_n = chunk_n * cpb
    n_blocks = -(-HW_p // block_n)
    has_tail = (HW % block_n) != 0            # only then is any mask needed

    kernel = functools.partial(
        _focal_kernel, alpha=float(alpha), gamma=float(gamma), eps=float(eps),
        onehot_eps=float(onehot_eps), chunk_n=chunk_n, chunks_per_block=cpb,
        block_n=block_n, valid_hw=HW, has_tail=has_tail)

    partials = pl.pallas_call(
        kernel,
        out_shape=jax.ShapeDtypeStruct((B, n_blocks, C, 128), jnp.float32),
        grid_spec=pltpu.PrefetchScalarGridSpec(
            num_scalar_prefetch=0,
            grid=(B, n_blocks),
            in_specs=[
                pl.BlockSpec((None, C, block_n), lambda b, j: (b, 0, j)),
                pl.BlockSpec((None, 1, block_n), lambda b, j: (b, 0, j)),
            ],
            # each grid step owns its output block -> no accumulation axis
            out_specs=pl.BlockSpec((None, None, C, 128),
                                   lambda b, j: (b, j, 0, 0)),
        ),
        compiler_params=pltpu.CompilerParams(
            dimension_semantics=("parallel", "parallel")),
    )(x, t)

    # reduction='mean': tiny epilogue reduce of the (B, n_blocks, C, 128) partials.
    return jnp.sum(partials) / (B * HW)


def focal_loss_ref(x_nchw, target_bhw, *, alpha, gamma=2.0, eps=1e-8,
                   ignore_index=30, onehot_eps=1e-6):
    """Pure-JAX reference mirroring the PyTorch code, for sanity checking."""
    B, C, H, W = x_nchw.shape
    p = jax.nn.softmax(x_nchw, axis=1) + eps
    oh = jax.nn.one_hot(target_bhw, ignore_index + 1, axis=1,
                        dtype=x_nchw.dtype)[:, :C] + onehot_eps
    focal = -alpha * jnp.power(1.0 - p, gamma) * jnp.log(p)
    return jnp.mean(jnp.sum(oh * focal, axis=1))


if __name__ == "__main__":
    key = jax.random.PRNGKey(0)
    kx, kt, km = jax.random.split(key, 3)

    B, C, H, W = 2, 4, 16, 16
    alpha = 0.25
    gamma = 2.0
    ignore_index = 30

    x = jax.random.normal(kx, (B, C, H, W), dtype=jnp.float32)
    target = jax.random.randint(kt, (B, H, W), 0, C, dtype=jnp.int32)
    # sprinkle in some ignore_index labels to exercise the one-hot floor path
    ignore_mask = jax.random.uniform(km, (B, H, W)) < 0.1
    target = jnp.where(ignore_mask, ignore_index, target)

    loss = focal_loss_pallas(x, target, alpha=alpha, gamma=gamma,
                             ignore_index=ignore_index)
    loss = jax.block_until_ready(loss)

    ref = focal_loss_ref(x, target, alpha=alpha, gamma=gamma,
                         ignore_index=ignore_index)
    assert jnp.isfinite(loss), loss
    assert jnp.allclose(loss, ref, rtol=1e-5, atol=2e-6), (loss, ref)

    print("KERNEL_OK")
</pallas_src>

<mosaic_0001>
module attributes {stable_mosaic.version = 11 : i64} {
  func.func @_focal_kernel(%arg0: i32, %arg1: i32, %arg2: memref<1x4x256xf32, #tpu.memory_space<vmem>>, %arg3: memref<1x1x256xi32, #tpu.memory_space<vmem>>, %arg4: memref<1x1x4x128xf32, #tpu.memory_space<vmem>>) attributes {dimension_semantics = [#tpu.dimension_semantics<parallel>, #tpu.dimension_semantics<parallel>], iteration_bounds = array<i64: 2, 1>, scalar_prefetch = 0 : i64, scratch_operands = 0 : i64, tpu.core_type = #tpu.core_type<tc>, window_params = [{transform_indices = @transform_0, window_bounds = array<i64: 1, 4, 256>}, {transform_indices = @transform_1, window_bounds = array<i64: 1, 1, 256>}, {transform_indices = @transform_2, window_bounds = array<i64: 1, 1, 4, 128>}]} {
    %0 = tpu.iota {dimensions = array<i32: 0>} : vector<4x256xi32>
    %cst = arith.constant 0.000000e+00 : f32
    %1 = vector.broadcast %cst : f32 to vector<4x128xf32>
    %cst_0 = arith.constant -18.420681 : f32
    %cst_1 = arith.constant -0.250000238 : f32
    %cst_2 = arith.constant -2.500000e-07 : f32
    %c0_i32 = arith.constant 0 : i32
    %c256_i32 = arith.constant 256 : i32
    %2 = arith.muli %c0_i32, %c256_i32 : i32
    %3 = tpu.assume_multiple %2, 128 : i32
    %c0 = arith.constant 0 : index
    %c0_3 = arith.constant 0 : index
    %4 = arith.index_cast %3 : i32 to index
    %5 = vector.load %arg2[%c0, %c0_3, %4] : memref<1x4x256xf32, #tpu.memory_space<vmem>>, vector<1x4x256xf32>
    %6 = vector.shape_cast %5 : vector<1x4x256xf32> to vector<4x256xf32>
    %c0_4 = arith.constant 0 : index
    %c0_5 = arith.constant 0 : index
    %7 = arith.index_cast %3 : i32 to index
    %8 = vector.load %arg3[%c0_4, %c0_5, %7] : memref<1x1x256xi32, #tpu.memory_space<vmem>>, vector<1x1x256xi32>
    %9 = vector.shape_cast %8 : vector<1x1x256xi32> to vector<1x256xi32>
    %cst_6 = arith.constant dense<0xFF800000> : vector<256xf32>
    %10 = vector.multi_reduction <maximumf>, %6, %cst_6 [0] : vector<4x256xf32> to vector<256xf32>
    %11 = vector.shape_cast %10 : vector<256xf32> to vector<1x256xf32>
    %12 = vector.broadcast %11 : vector<1x256xf32> to vector<4x256xf32>
    %13 = arith.subf %6, %12 : vector<4x256xf32>
    %14 = math.exp %13 : vector<4x256xf32>
    %cst_7 = arith.constant dense<0.000000e+00> : vector<256xf32>
    %15 = vector.multi_reduction <add>, %14, %cst_7 [0] : vector<4x256xf32> to vector<256xf32>
    %16 = vector.shape_cast %15 : vector<256xf32> to vector<1x256xf32>
    %cst_8 = arith.constant 1.000000e+00 : f32
    %17 = vector.broadcast %cst_8 : f32 to vector<1x256xf32>
    %18 = arith.divf %17, %16 : vector<1x256xf32>
    %19 = vector.broadcast %18 : vector<1x256xf32> to vector<4x256xf32>
    %20 = arith.mulf %14, %19 : vector<4x256xf32>
    %21 = math.log %16 : vector<1x256xf32>
    %22 = vector.broadcast %21 : vector<1x256xf32> to vector<4x256xf32>
    %23 = arith.subf %13, %22 : vector<4x256xf32>
    %24 = vector.broadcast %cst_0 : f32 to vector<4x256xf32>
    %25 = arith.maximumf %23, %24 : vector<4x256xf32>
    %cst_9 = arith.constant 1.000000e+00 : f32
    %26 = vector.broadcast %cst_9 : f32 to vector<4x256xf32>
    %27 = arith.subf %26, %20 : vector<4x256xf32>
    %28 = arith.mulf %27, %27 : vector<4x256xf32>
    %29 = vector.broadcast %9 : vector<1x256xi32> to vector<4x256xi32>
    %30 = arith.cmpi eq, %0, %29 : vector<4x256xi32>
    %31 = vector.broadcast %cst_1 : f32 to vector<4x256xf32>
    %32 = vector.broadcast %cst_2 : f32 to vector<4x256xf32>
    %33 = arith.select %30, %31, %32 : vector<4x256xi1>, vector<4x256xf32>
    %34 = arith.mulf %28, %25 : vector<4x256xf32>
    %35 = arith.mulf %33, %34 : vector<4x256xf32>
    %36 = vector.extract_strided_slice %35 {offsets = [0, 0], sizes = [4, 128], strides = [1, 1]} : vector<4x256xf32> to vector<4x128xf32>
    %37 = vector.extract_strided_slice %35 {offsets = [0, 128], sizes = [4, 128], strides = [1, 1]} : vector<4x256xf32> to vector<4x128xf32>
    %38 = arith.addf %36, %37 : vector<4x128xf32>
    %39 = arith.addf %1, %38 : vector<4x128xf32>
    %c1_i32 = arith.constant 1 : i32
    %c0_10 = arith.constant 0 : index
    %c0_11 = arith.constant 0 : index
    %c0_12 = arith.constant 0 : index
    %c0_13 = arith.constant 0 : index
    %40 = vector.load %arg4[%c0_10, %c0_11, %c0_12, %c0_13] : memref<1x1x4x128xf32, #tpu.memory_space<vmem>>, vector<1x1x4x128xf32>
    %41 = vector.shape_cast %40 : vector<1x1x4x128xf32> to vector<4x128xf32>
    %42 = vector.shape_cast %39 : vector<4x128xf32> to vector<1x1x4x128xf32>
    tpu.vector_store %arg4[%c0_10, %c0_11, %c0_12, %c0_13], %42 {strides = array<i32>} : memref<1x1x4x128xf32, #tpu.memory_space<vmem>>, vector<1x1x4x128xf32>,
    return
  }
  func.func @transform_0(%arg0: i32, %arg1: i32) -> (i32, i32, i32) {
    %c0_i32 = arith.constant 0 : i32
    %c0_i32_0 = arith.constant 0 : i32
    return %arg0, %c0_i32, %arg1 : i32, i32, i32
  }
  func.func @transform_1(%arg0: i32, %arg1: i32) -> (i32, i32, i32) {
    %c0_i32 = arith.constant 0 : i32
    %c0_i32_0 = arith.constant 0 : i32
    return %arg0, %c0_i32, %arg1 : i32, i32, i32
  }
  func.func @transform_2(%arg0: i32, %arg1: i32) -> (i32, i32, i32, i32) {
    %c0_i32 = arith.constant 0 : i32
    %c0_i32_0 = arith.constant 0 : i32
    %c0_i32_1 = arith.constant 0 : i32
    return %arg0, %arg1, %c0_i32, %c0_i32_0 : i32, i32, i32, i32
  }
}

</mosaic_0001>

<bundles_post_ra>
// kernel: tpu_custom_call.1
= control target key start
LH: loop header
LB: loop body
LE: loop exit
PB: predicated region body
PF: predicated region fallthrough
CT: control target
= control target key end

     0   :  { %7 = vsyncpa [#allocation3], 0  ;;  %s865_s0 = inlined_call_operand.hbm [shape: f32[2,4,256], index: 0, kind: input, shape index: {}]   ;;  %s866_s1 = inlined_call_operand.hbm [shape: s32[2,1,256], index: 1, kind: input, shape index: {}]   ;;  %s867_s2 = inlined_call_operand.hbm [shape: f32[2,1,4,128], index: 2, kind: output, shape index: {}]  }
   0x1   :  { %9 = vsyncpa [#allocation3 + $0x1], 0 }
   0x2   :  { %10 = vsyncpa [#allocation6], 0 }
   0x3   :  { %12 = vsyncpa [#allocation6 + $0x1], 0 }
   0x4   :  { %13 = vsyncpa [#allocation4], 0 }
   0x5   :  { %15 = vsyncpa [#allocation4 + $0x1], 0  ;;  %s693_s9 = smov 0   ;;  %s695_s10 = smov 0  }
   0x6   :  { %s697_s11 = smov 0   ;;  %s699_s12 = smov 0  }
   0x7   :  { %s701_s13 = smov 0   ;;  %s703_s14 = smov 0  }
   0x8 LB: > { %s433_s15 = sadd.s32 4294967295, %s672_s14   ;;  %s434_s16 = sadd.s32 4294967294, %s672_s14   ;;  %s672_s14 = sphi %s703_s14, %s21_s14   ;;  %s668_s13 = sphi %s701_s13, %s879_s13   ;;  %s664_s12 = sphi %s699_s12, %s878_s12   ;;  %s660_s11 = sphi %s697_s11, %s877_s11   ;;  %s656_s10 = sphi %s695_s10, %s876_s10   ;;  %s652_s9 = sphi %s693_s9, %s875_s9  }
   0x9   : > { %s33_s17 = sadd.s32 1, %s668_s13  ;;  %s42_s18 = sadd.s32 1, %s660_s11 }
   0xa   : > { %p35_p0 = scmp.ge.s32.totalorder %s33_s17, 2  ;;  %p49_p1 = scmp.ne.s32.totalorder %s660_s11, %s656_s10 }
   0xb   : > { %p50_p2 = scmp.eq.s32.totalorder %s672_s14, 0  ;;  %p55_p3 = scmp.ne.s32.totalorder %s656_s10, %s652_s9 }
   0xc   : > { %s881_s17 = smov (%p35_p0, %s33_s17), 0  ;;  %p56_p5 = scmp.eq.s32.totalorder %s433_s15, 0 }
   0xd   : > { %p734_p4 = por %p50_p2, %p49_p1  ;;  %s37_s20 = ssub.s32 %s668_s13, %s881_s17 }
   0xe   : > { %p109_p6 = scmp.eq.s32.totalorder %s433_s15, 1  ;;  %p40_p7 = scmp.eq.s32.totalorder %s37_s20, 0 }
   0xf   : > { %p740_p8 = por %p56_p5, %p55_p3  ;;  %p115_p10 = scmp.eq.s32.totalorder %s434_s16, 1 }
  0x10   : > { %p744_p9 = por %p109_p6, %p49_p1  ;;  %p470_p13 = scmp.lt.s32.totalorder %s672_s14, 2 }
  0x11   : > { %s749_s23 = scalar_select %p40_p7, %s660_s11, %s42_s18  }
  0x12   : > { %p751_p11 = por %p115_p10, %p55_p3  ;;  %s758_s25 = sand.u32 1, %s660_s11  }
  0x13   : > { %s437_s26 = sshll.u32 %s758_s25, 3  ;;  %s451_s27 = sshll.u32 %s668_s13, 7 }
  0x14   : > { %s147_s30 = scalar_lea.hbm %s865_s0, %s451_s27  ;;  %s139_s3 = scalar_lea.vmem [#allocation2], %s437_s26 }
  0x15   : > { %s149_s4 = sshll.u32 %s139_s3, 4  ;;  %p767_p0 = pnand %p470_p13, %p734_p4  ;;  %s150_s4 = int_to_ptr.vmem [resolvable:$true] %s149_s4 }
  0x16   : > { %p443_p1 = scmp.ge.s32.totalorder %s672_s14, 1  ;;  %p175_p2 = scmp.lt.s32.totalorder %s672_s14, 3 }
  0x17   : > { %s136_s6 = scalar_lea.sflag [#allocation3], %s758_s25  ;;  %p534_p3 = pneg %p767_p0 }
  0x18   : > { %s545_s7 = scalar_lea.vmem %s150_s4, 128  ;;  %s674_s8 = smov [#allocation2]  }
  0x19   : > { %p546_p5 = scmp.ne.s32.totalorder %s150_s4, %s545_s7  ;;  %s550_s15 = sshll.u32 %s674_s8, 4  ;;  %s551_s15 = int_to_ptr.vmem [resolvable:$false] %s550_s15 }
  0x1a   : > { %s552_s16 = scalar_lea.vmem %s551_s15, 256  ;;  %p553_p4 = scmp.lt.s32.totalorder %s150_s4, %s551_s15 }
  0x1b   : > { %p548_p6 = pnand %p546_p5, %p534_p3  ;;  %p554_p10 = scmp.lt.s32.totalorder %s552_s16, %s545_s7 }
  0x1d   : > { %p549_p7 = pneg %p548_p6  ;;  %p555_p13 = por %p554_p10, %p553_p4 }
  0x1f   : > { %p556_p12 = pnand %p555_p13, %p549_p7 }
  0x21   : > { %559 = shalt.err (!%p556_p12)
}
  0x22   : > { %462 = dma.hbm_to_vmem [thread:$0]  (!%p767_p0), %s147_s30, 128, %s150_s4, %s136_s6  }
  0x23   : > { %p785_p5 = pnand %p443_p1, %p175_p2  ;;  %s440_s19 = sshll.u32 %s758_s25, 1 }
  0x24   : > { %s452_s20 = sshll.u32 %s668_s13, 5  ;;  %s160_s29 = scalar_lea.vmem [#allocation5], %s440_s19 }
  0x25   : > { %s168_s28 = scalar_lea.hbm %s866_s1, %s452_s20  ;;  %s170_s3 = sshll.u32 %s160_s29, 4  ;;  %s171_s3 = int_to_ptr.vmem [resolvable:$true] %s170_s3 }
  0x26   : > { %s157_s7 = scalar_lea.sflag [#allocation6], %s758_s25  ;;  %s573_s8 = scalar_lea.vmem %s171_s3, 32 }
  0x27   : > { %p574_p12 = scmp.ne.s32.totalorder %s171_s3, %s573_s8  ;;  %s675_s30 = smov [#allocation5]  }
  0x28   : > { %s578_s4 = sshll.u32 %s675_s30, 4  ;;  %s579_s4 = int_to_ptr.vmem [resolvable:$false] %s578_s4 }
  0x29   : > { %p576_p6 = pnand %p574_p12, %p534_p3  ;;  %s580_s6 = scalar_lea.vmem %s579_s4, 64 }
  0x2a   : > { %p581_p1 = scmp.lt.s32.totalorder %s171_s3, %s579_s4  ;;  %p582_p2 = scmp.lt.s32.totalorder %s580_s6, %s573_s8 }
  0x2b   : > { %p577_p7 = pneg %p576_p6 }
  0x2c   : > { %p583_p4 = por %p582_p2, %p581_p1 }
  0x2e   : > { %p584_p10 = pnand %p583_p4, %p577_p7 }
  0x30   : > { %587 = shalt.err (!%p584_p10)
}
  0x31   : > { %465 = dma.hbm_to_vmem [thread:$0]  (!%p767_p0), %s168_s28, 32, %s171_s3, %s157_s7  }
  0x32   : > { %179 = sbr.rel (%p785_p5) target bundleno = 154 (0x9a), region = 28  ;;  %s803_s25 = sand.u32 (!%p785_p5), 1, %s656_s10  }
  0x33   : > { %s444_s15 = sshll.u32 (!%p785_p5), %s803_s25, 3  ;;  %s182_s16 = scalar_lea.sflag (!%p785_p5), [#allocation3], %s803_s25 }
  0x34   : > { %s185_s19 = scalar_lea.vmem (!%p785_p5), [#allocation2], %s444_s15 }
  0x37   : > { %639 = dma.done.wait (%p740_p8), %s182_s16, 128  }
  0x38   : > { %641 = vsyncadd (%p740_p8), %s182_s16, 4294967168  ;;  %s445_s5 = sshll.u32 %s803_s25, 1  ;;  %s191_s18 = scalar_lea.sflag [#allocation6], %s803_s25 }
  0x39   : > { %s813_s20 = scalar_lea.vmem [#allocation5], %s445_s5 }
  0x3a   : > { %643 = dma.done.wait (%p740_p8), %s191_s18, 32  }
  0x3b   : > { %645 = vsyncadd (%p740_p8), %s191_s18, 4294967264  ;;  %vm229_vm0 = vcmask 1043456   ;;  %v224_v0 = vld [vmem:[%s185_s19] sm:$0xff]  ;;  %v222_v35 = vlaneseq  ;;  %v225_v40 = vld [vmem:[%s813_s20] sm:$0x3]  ;;  %s446_s21 = sshll.u32 %s803_s25, 2 }
  0x3c   : > { %v227_v1 = vcombine.high %v224_v0, %v224_v0  ;;  %v230_v2 = vsel %vm229_vm0, %v224_v0, -inf  ;;  %v676_v55 = vmov -2.5e-07   ;;  %s219_s26 = scalar_lea.vmem [#allocation7], %s446_s21  ;;  %s448_s28 = sshll.u32 %s664_s12, 6 }
  0x3d   : > { %v231_v3 = vrot.slane %v230_v2, 4  ;;  %v223_v36 = vshrl.u32 %v222_v35, 7  ;;  %s325_s27 = sshll.u32 %s219_s26, 4  ;;  %s323_s7 = scalar_lea.hbm %s867_s2, %s448_s28  ;;  %s326_s27 = int_to_ptr.vmem [resolvable:$true] %s325_s27 }
  0x3e   : > { %v237_v4 = vsel %vm229_vm0, %v227_v1, -inf  ;;  %s311_s8 = scalar_lea.sflag [#allocation4], %s803_s25  ;;  %s588_s30 = scalar_lea.vmem %s326_s27, 64 }
  0x3f   : > { %v232_v5 = vmax.f32 %v230_v2, %v231_v3  ;;  %v238_v6 = vrot.slane %v237_v4, 4  ;;  %v291_v38 = vsub.s32 0, %v223_v36  ;;  %v295_v43 = vsub.s32 1, %v223_v36  ;;  %p589_p8 = scmp.ne.s32.totalorder %s326_s27, %s588_s30  ;;  %s677_s4 = smov [#allocation7]  }
  0x40   : > { %s592_s6 = sshll.u32 %s677_s4, 4  ;;  %s593_s6 = int_to_ptr.vmem [resolvable:$false] %s592_s6 }
  0x41   : > { %v233_v7 = vrot.slane %v232_v5, 2  ;;  %v239_v8 = vmax.f32 %v237_v4, %v238_v6  ;;  %v292_v47 = vrot.slane %v225_v40, %v291_v38  ;;  %v296_v50 = vrot.slane %v225_v40, %v295_v43  ;;  %p590_p0 = pnand %p589_p8, %p744_p9  ;;  %s594_s15 = scalar_lea.vmem %s593_s6, 128 }
  0x42   : > { %p595_p13 = scmp.lt.s32.totalorder %s326_s27, %s593_s6  ;;  %p596_p5 = scmp.lt.s32.totalorder %s594_s15, %s588_s30 }
  0x43   : > { %v234_v9 = vmax.f32 %v232_v5, %v233_v7  ;;  %v240_v10 = vrot.slane %v239_v8, 2  ;;  %vm297_vm1 = vcmp.eq.s32.totalorder %v223_v36, %v292_v47  ;;  %vm298_vm2 = vcmp.eq.s32.totalorder %v223_v36, %v296_v50  ;;  %p591_p3 = pneg %p590_p0 }
  0x44   : > { %v299_v56 = vsel %vm297_vm1, -0.25000024, %v676_v55  ;;  %v300_v58 = vsel %vm298_vm2, -0.25000024, %v676_v55  ;;  %p597_p12 = por %p596_p5, %p595_p13 }
  0x45   : > { %v235_v11 = vrot.slane %v234_v9, 1  ;;  %v241_v12 = vmax.f32 %v239_v8, %v240_v10 }
  0x46   : > { %p598_p6 = pnand %p597_p12, %p591_p3 }
  0x47   : > { %v236_v13 = vmax.f32 %v234_v9, %v235_v11  ;;  %v242_v14 = vrot.slane %v241_v12, 1 }
  0x49   : > { %v243_v15 = vmax.f32 %v241_v12, %v242_v14 }
  0x4b   : > { %v246_v16 = vcombine.low %v236_v13, %v243_v15 }
  0x4d   : > { %v248_v17 = vsub.f32 %v224_v0, %v246_v16 }
  0x4f   : > { %v249_v18 = vmul.f32 1.442695, %v248_v17 }
  0x51   : > { %522 = vpow2.f32 %v249_v18 }
  0x5e   : > { %v523_v19 = vpop.eup %522 }
  0x5f   : > { %v252_v20 = vcombine.high %v523_v19, %v523_v19  ;;  %v254_v21 = vsel %vm229_vm0, %v523_v19, 0.0 }
  0x60   : > { %v255_v22 = vrot.slane %v254_v21, 4 }
  0x61   : > { %v261_v23 = vsel %vm229_vm0, %v252_v20, 0.0 }
  0x62   : > { %v256_v24 = vadd.f32 %v255_v22, %v254_v21  ;;  %v262_v25 = vrot.slane %v261_v23, 4 }
  0x64   : > { %v257_v26 = vrot.slane %v256_v24, 2  ;;  %v263_v27 = vadd.f32 %v262_v25, %v261_v23 }
  0x66   : > { %v258_v28 = vadd.f32 %v257_v26, %v256_v24  ;;  %v264_v29 = vrot.slane %v263_v27, 2 }
  0x68   : > { %v259_v30 = vrot.slane %v258_v28, 1  ;;  %v265_v31 = vadd.f32 %v264_v29, %v263_v27 }
  0x6a   : > { %v260_v32 = vadd.f32 %v259_v30, %v258_v28  ;;  %v266_v33 = vrot.slane %v265_v31, 1 }
  0x6c   : > { %v267_v34 = vadd.f32 %v266_v33, %v265_v31  ;;  %524 = vrcp.f32 %v260_v32 }
  0x6d   : > { %526 = vlog2.f32 %v260_v32 }
  0x6e   : > { %528 = vrcp.f32 %v267_v34 }
  0x6f   : > { %530 = vlog2.f32 %v267_v34 }
  0x79   : > { %v525_v37 = vpop.eup %524 }
  0x7a   : > { %v527_v39 = vpop.eup %526 }
  0x7b   : > { %v529_v41 = vpop.eup %528  ;;  %v278_v42 = vmul.f32 0.6931472, %v527_v39 }
  0x7c   : > { %v531_v44 = vpop.eup %530  ;;  %v274_v45 = vcombine.low %v525_v37, %v529_v41 }
  0x7d   : > { %v280_v46 = vmul.f32 0.6931472, %v531_v44 }
  0x7e   : > { %v276_v48 = vmul.f32 %v523_v19, %v274_v45 }
  0x7f   : > { %v283_v49 = vcombine.low %v278_v42, %v280_v46 }
  0x80   : > { %v287_v51 = vsub.f32 1.0, %v276_v48 }
  0x81   : > { %v285_v52 = vsub.f32 %v248_v17, %v283_v49 }
  0x82   : > { %v288_v53 = vmul.f32 %v287_v51, %v287_v51 }
  0x83   : > { %v286_v54 = vmax.f32 %v285_v52, -18.420681 }
  0x85   : > { %v301_v57 = vmul.f32 %v288_v53, %v286_v54 }
  0x87   : > { %v303_v59 = vcombine.high %v301_v57, %v301_v57  ;;  %v305_v60 = vmul.f32 %v301_v57, %v299_v56 }
  0x89   : > { %v306_v61 = vmul.f32 %v303_v59, %v300_v58 }
  0x8b   : > { %v307_v62 = vadd.f32 %v306_v61, %v305_v60 }
  0x8d   : > { %309 = vst [vmem:[%s219_s26] sm:$0xf] %v307_v62 }
  0x8e   : > { %601 = shalt.err (!%p598_p6)
}
  0x8f   : > { %s602_s12 = scalar_lea.hbm %s323_s7, 64  ;;  %s606_s19 = scalar_lea.hbm %s867_s2, 128 }
  0x90   : > { %p603_p7 = scmp.ne.s32.totalorder %s323_s7, %s602_s12  ;;  %p607_p4 = scmp.lt.s32.totalorder %s323_s7, %s867_s2 }
  0x91   : > { %p608_p10 = scmp.lt.s32.totalorder %s606_s19, %s602_s12 }
  0x92   : > { %p604_p1 = pnand %p603_p7, %p744_p9 }
  0x93   : > { %p609_p8 = por %p608_p10, %p607_p4 }
  0x94   : > { %p605_p2 = pneg %p604_p1 }
  0x96   : > { %p610_p0 = pnand %p609_p8, %p605_p2 }
  0x98   : > { %613 = shalt.err (!%p610_p0)
}
  0x99   : > { %457 = dma.vmem_to_hbm [thread:$0]  (%p744_p9), %s326_s27, 64, %s323_s7, %s311_s8  }
  0x9a PF: > { %s337_s20 = sand.u32 1, %s652_s9   ;;  %p874_p3 = scmp.ge.s32.totalorder %s672_s14, 2 }
  0x9b   : > { %s338_s21 = scalar_lea.sflag [#allocation4], %s337_s20 }
  0x9c   : > { %p467_p13 = pnand %p874_p3, %p751_p11 }
  0x9e   : > { %p468_p5 = pneg %p467_p13 }
  0xa0   : > { %647 = dma.done.wait (%p468_p5), %s338_s21, 64  }
  0xa1   : > { %649 = vsyncadd (%p468_p5), %s338_s21, 4294967232  ;;  %s21_s14 = sadd.s32 1, %s672_s14   ;;  %s875_s9 = smov %s656_s10 }
  0xa2   : > { %p18_p12 = scmp.ge.s32.totalorder %s21_s14, 4   ;;  %s876_s10 = smov %s660_s11 }
  0xa3   : > { %s877_s11 = smov %s749_s23  ;;  %s878_s12 = smov %s668_s13 }
  0xa4   : > { %s879_s13 = smov %s881_s17  ;;  %20 = sbr.rel (!%p18_p12) target bundleno = 8 (0x8), region = 86 }
  0xa9   :  { %343 = vsyncpa [#allocation3], 1 }
  0xaa   :  { %345 = vsyncpa [#allocation3 + $0x1], 1 }
  0xab   :  { %346 = vsyncpa [#allocation6], 1 }
  0xac   :  { %348 = vsyncpa [#allocation6 + $0x1], 1 }
  0xad   :  { %349 = vsyncpa [#allocation4], 1 }
  0xae   :  { %351 = vsyncpa [#allocation4 + $0x1], 1 }

</bundles_post_ra>
